<compile_context>
chip_gen: v7x
topology: tpu7x:2x2x1
jax: 0.10.0
libtpu: 0.0.40
codegen_flags: <defaults>
</compile_context>

<pallas_src>
import jax
import jax.numpy as jnp
from jax.experimental import pallas as pl
from jax.experimental.pallas import tpu as pltpu


def _round_up(a, b):
    return (a + b - 1) // b * b


def _gelu_exact(x):
    # nn.GELU() / ACT2FN["gelu"] is the exact erf-based GELU.
    # TODO(synk): switch to the tanh approximation only if the model config
    # uses projector_hidden_act == "gelu_pytorch_tanh" (changes numerics).
    return 0.5 * x * (1.0 + jax.lax.erf(x * 0.7071067811865476))


def _tpu_vmem_capacity_bytes():
    try:
        return int(pltpu.get_tpu_info().vmem_capacity_bytes)
    except Exception:
        return 64 << 20  # conservative default (v7x per-TensorCore VMEM)


def _num_tensorcores():
    try:
        dev = jax.devices()[0]
        kind = (getattr(dev, "device_kind", "") or "").lower()
        if "v7" in kind:
            return 2
        for attr in ("num_cores", "core_count"):
            n = getattr(dev, attr, None)
            if n:
                return int(n)
    except Exception:
        pass
    return 1


_TM_CANDIDATES = (1024, 896, 768, 640, 576, 512, 448, 384, 320, 288,
                  256, 224, 192, 160, 128, 96, 64, 48, 32, 16)


def _pick_tm(M, tm_cap, min_row_tiles=1):
    """Largest MXU-friendly row tile <= tm_cap, preferring exact divisors of M."""
    Mr = _round_up(max(M, 1), 16)
    cap = min(tm_cap, Mr)
    if min_row_tiles > 1:
        cap = min(cap, max(16, _round_up(pl.cdiv(Mr, min_row_tiles), 16)))
    for tm in _TM_CANDIDATES:        # zero-padding tiles first
        if tm <= cap and M % tm == 0:
            return tm
    for tm in _TM_CANDIDATES:        # otherwise accept some padding
        if tm <= cap:
            return tm
    return 16


def _pick_tn(T, desired=1024):
    for tn in (desired, 512, 256, 128):
        if tn <= T and T % tn == 0:
            return tn
    return T


def _resident_kernel(x_ref, w1_ref, b1_ref, w2_ref, b2_ref, o_ref, h_ref):
    # Whole w1 / w2 resident in VMEM; one row tile per grid step.
    h = jnp.dot(x_ref[...], w1_ref[...], preferred_element_type=jnp.float32)
    h = _gelu_exact(h + b1_ref[...])               # bias broadcast (1, T)
    h_ref[...] = h.astype(h_ref.dtype)
    y = jnp.dot(h_ref[...], w2_ref[...], preferred_element_type=jnp.float32)
    o_ref[...] = (y + b2_ref[...]).astype(o_ref.dtype)


def _streamed_kernel(x_ref, w1_ref, b1_ref, w2_ref, b2_ref, o_ref, h_ref):
    # Grid = (row tiles i, w2-column tiles j).  h = gelu(x @ w1 + b1) for the
    # current row tile is computed once (j == 0) into VMEM scratch and reused
    # across every column tile of w2.
    @pl.when(pl.program_id(1) == 0)
    def _():
        h = jnp.dot(x_ref[...], w1_ref[...], preferred_element_type=jnp.float32)
        h = _gelu_exact(h + b1_ref[...])
        h_ref[...] = h.astype(h_ref.dtype)

    y = jnp.dot(h_ref[...], w2_ref[...], preferred_element_type=jnp.float32)
    o_ref[...] = (y + b2_ref[...]).astype(o_ref.dtype)


def llava_multimodal_projector(image_features, w1, b1, w2, b2, *,
                               compute_dtype=jnp.bfloat16, out_dtype=None):
    """image_features: [B, S, V] -> [B, S, T].

    For production, cast w1/w2 to `compute_dtype` once at model load so the
    per-call .astype below is a no-op (avoids re-reading w2 from HBM for the
    cast every call).
    """
    B, S, V = image_features.shape
    Vw, T = w1.shape
    assert Vw == V and w2.shape == (T, T) and b1.shape == (T,) and b2.shape == (T,)
    if out_dtype is None:
        out_dtype = image_features.dtype

    M = B * S
    cb = jnp.dtype(compute_dtype).itemsize
    ob = jnp.dtype(out_dtype).itemsize

    vmem_cap = _tpu_vmem_capacity_bytes()
    avail = vmem_cap - (8 << 20)                 # headroom for Mosaic internals
    n_cores = _num_tensorcores()
    min_row_tiles = 2 if (n_cores >= 2 and M >= 512) else 1

    tn = _pick_tn(T)
    bias_bytes = 2 * 2 * 8 * T * 4               # (1,T)/(1,tn) f32 biases, padded + dbl-buffered

    # Conservative budgets: assume double-buffering everywhere plus f32 matmul
    # result temporaries, so the non-Buffered(1) fallback always fits.
    def resident_budget(tm):
        return (2 * tm * V * cb                  # x row tile
                + 2 * V * T * cb                 # w1
                + 2 * T * T * cb                 # w2
                + bias_bytes
                + 2 * tm * T * ob                # output tile
                + tm * T * cb                    # h scratch (compute dtype)
                + 2 * tm * T * 4)                # f32 dot results (heuristic)

    def streamed_budget(tm):
        return (2 * tm * V * cb
                + 2 * V * T * cb                 # w1 (resident, constant index)
                + 2 * T * tn * cb                # w2 column tile
                + bias_bytes
                + 2 * tm * tn * ob               # output tile
                + tm * T * cb                    # h scratch
                + tm * T * 4 + tm * tn * 4)      # f32 dot results (heuristic)

    use_resident = resident_budget(_pick_tm(M, 128, min_row_tiles)) <= avail
    budget_fn = resident_budget if use_resident else streamed_budget

    tm = _pick_tm(M, 1024, min_row_tiles)
    while tm > 16 and budget_fn(tm) > avail:
        tm = _pick_tm(M, tm - 16, min_row_tiles)

    Mp = _round_up(M, tm)
    n_m = Mp // tm

    x2d = image_features.reshape(M, V).astype(compute_dtype)
    if Mp != M:
        # Padded rows compute gelu(b1) @ w2 + b2 (garbage) and are sliced off
        # below; nothing downstream ever sees them.
        x2d = jnp.pad(x2d, ((0, Mp - M), (0, 0)))
    w1c = w1.astype(compute_dtype)               # no-op if pre-cast at load
    w2c = w2.astype(compute_dtype)
    b1_2d = b1.reshape(1, T).astype(jnp.float32)
    b2_2d = b2.reshape(1, T).astype(jnp.float32)

    # Cap the scoped VMEM limit at the real chip capacity (64 MiB on v7x,
    # 128 MiB on v5e/v6e) minus a small margin.
    vmem_limit = int(max(32 << 20, vmem_cap - (2 << 20)))

    def build_and_run(single_buffer_consts):
        pm = pl.Buffered(1) if single_buffer_consts else None

        def const_spec(shape):
            ndim = len(shape)
            idx = lambda *_: (0,) * ndim
            if pm is None:
                return pl.BlockSpec(shape, idx)
            return pl.BlockSpec(shape, idx, pipeline_mode=pm)

        if use_resident:
            grid = (n_m,)
            in_specs = [
                pl.BlockSpec((tm, V), lambda i: (i, 0)),     # x row tile
                const_spec((V, T)),                          # w1 (resident)
                const_spec((1, T)),                          # b1
                const_spec((T, T)),                          # w2 (resident)
                const_spec((1, T)),                          # b2
            ]
            out_spec = pl.BlockSpec((tm, T), lambda i: (i, 0))
            kernel = _resident_kernel
            semantics = ("parallel",)
            bytes_accessed = (Mp * V * cb + V * T * cb + T * T * cb
                              + 2 * T * 4 + Mp * T * ob)
        else:
            n_n = T // tn
            grid = (n_m, n_n)
            in_specs = [
                pl.BlockSpec((tm, V), lambda i, j: (i, 0)),  # x row tile
                const_spec((V, T)),                          # w1 (resident)
                const_spec((1, T)),                          # b1
                pl.BlockSpec((T, tn), lambda i, j: (0, j)),  # w2 column tile
                pl.BlockSpec((1, tn), lambda i, j: (0, j)),  # b2 column tile
            ]
            out_spec = pl.BlockSpec((tm, tn), lambda i, j: (i, j))
            kernel = _streamed_kernel
            semantics = ("parallel", "arbitrary")
            # w2 is re-streamed once per row tile.
            bytes_accessed = (Mp * V * cb + V * T * cb + n_m * T * T * cb
                              + 2 * T * 4 + Mp * T * ob)

        cost = pl.CostEstimate(
            flops=int(2 * Mp * V * T + 2 * Mp * T * T),
            transcendentals=int(Mp * T),
            bytes_accessed=int(bytes_accessed),
        )

        return pl.pallas_call(
            kernel,
            out_shape=jax.ShapeDtypeStruct((Mp, T), out_dtype),
            grid_spec=pltpu.PrefetchScalarGridSpec(
                num_scalar_prefetch=0,
                grid=grid,
                in_specs=in_specs,
                out_specs=out_spec,
                scratch_shapes=[pltpu.VMEM((tm, T), compute_dtype)],  # h
            ),
            compiler_params=pltpu.CompilerParams(
                # Row tiles are independent -> megacore parallel; the w2-column
                # axis (streamed path) carries the h-scratch dependency.
                dimension_semantics=semantics,
                vmem_limit_bytes=vmem_limit,
            ),
            cost_estimate=cost,
        )(x2d, w1c, b1_2d, w2c, b2_2d)

    try:
        out2d = build_and_run(single_buffer_consts=True)
    except Exception:
        # pipeline_mode=pl.Buffered(1) not supported by this Pallas build;
        # fall back to default double-buffering of the constant operands.
        out2d = build_and_run(single_buffer_consts=False)

    return out2d[:M].reshape(B, S, T)


def _reference(image_features, w1, b1, w2, b2):
    h = jnp.einsum("bsv,vt->bst", image_features, w1) + b1
    h = _gelu_exact(h)
    return jnp.einsum("bst,tu->bsu", h, w2) + b2


if __name__ == "__main__":
    # Small config: vision_hidden=32, text_hidden=64, batch=2, seq=8.
    B, S = 2, 8
    VISION_HIDDEN, TEXT_HIDDEN = 32, 64

    key = jax.random.PRNGKey(0)
    kx, k1, kb1, k2, kb2 = jax.random.split(key, 5)

    image_features = jax.random.normal(kx, (B, S, VISION_HIDDEN), jnp.float32)
    # nn.Linear weights (stored transposed: [in, out]) + biases.
    w1 = jax.random.normal(k1, (VISION_HIDDEN, TEXT_HIDDEN), jnp.float32) * 0.05
    b1 = jax.random.normal(kb1, (TEXT_HIDDEN,), jnp.float32) * 0.01
    w2 = jax.random.normal(k2, (TEXT_HIDDEN, TEXT_HIDDEN), jnp.float32) * 0.05
    b2 = jax.random.normal(kb2, (TEXT_HIDDEN,), jnp.float32) * 0.01

    ref = _reference(image_features, w1, b1, w2, b2)

    # Strict correctness check: f32 compute path.
    out_f32 = llava_multimodal_projector(
        image_features, w1, b1, w2, b2, compute_dtype=jnp.float32)
    out_f32 = jax.block_until_ready(out_f32)
    assert out_f32.shape == (B, S, TEXT_HIDDEN)
    assert jnp.allclose(out_f32, ref, atol=1e-4, rtol=1e-4), "f32 mismatch vs reference"

    # Fast path: weights pre-cast to bf16 ONCE (cast hoisted out of the
    # per-call wrapper, as in a real model load), f32 accumulation in-kernel.
    # The bf16 h cast before the second matmul is the source of the looser
    # tolerance vs. the f32 reference.
    w1_bf16, w2_bf16 = w1.astype(jnp.bfloat16), w2.astype(jnp.bfloat16)
    out_bf16 = llava_multimodal_projector(image_features, w1_bf16, b1, w2_bf16, b2)
    out_bf16 = jax.block_until_ready(out_bf16)
    assert out_bf16.shape == (B, S, TEXT_HIDDEN)
    assert jnp.allclose(out_bf16, ref, atol=2e-2, rtol=2e-2), "bf16 mismatch vs reference"

    print("KERNEL_OK")
</pallas_src>

<mosaic_0001>
module attributes {stable_mosaic.version = 11 : i64} {
  func.func @_resident_kernel(%arg0: i32, %arg1: memref<16x32xf32, #tpu.memory_space<vmem>>, %arg2: memref<32x64xf32, #tpu.memory_space<vmem>>, %arg3: memref<1x64xf32, #tpu.memory_space<vmem>>, %arg4: memref<64x64xf32, #tpu.memory_space<vmem>>, %arg5: memref<1x64xf32, #tpu.memory_space<vmem>>, %arg6: memref<16x64xf32, #tpu.memory_space<vmem>>, %arg7: memref<16x64xf32, #tpu.memory_space<vmem>>) attributes {dimension_semantics = [#tpu.dimension_semantics<parallel>], iteration_bounds = array<i64: 1>, scalar_prefetch = 0 : i64, scratch_operands = 1 : i64, tpu.core_type = #tpu.core_type<tc>, window_params = [{transform_indices = @transform_0, window_bounds = array<i64: 16, 32>}, {pipeline_mode = #tpu.pipeline_mode<synchronous>, transform_indices = @transform_1, window_bounds = array<i64: 32, 64>}, {pipeline_mode = #tpu.pipeline_mode<synchronous>, transform_indices = @transform_2, window_bounds = array<i64: 1, 64>}, {pipeline_mode = #tpu.pipeline_mode<synchronous>, transform_indices = @transform_3, window_bounds = array<i64: 64, 64>}, {pipeline_mode = #tpu.pipeline_mode<synchronous>, transform_indices = @transform_4, window_bounds = array<i64: 1, 64>}, {transform_indices = @transform_5, window_bounds = array<i64: 16, 64>}]} {
    %c0 = arith.constant 0 : index
    %c0_0 = arith.constant 0 : index
    %0 = vector.load %arg1[%c0, %c0_0] : memref<16x32xf32, #tpu.memory_space<vmem>>, vector<16x32xf32>
    %c0_1 = arith.constant 0 : index
    %c0_2 = arith.constant 0 : index
    %1 = vector.load %arg2[%c0_1, %c0_2] : memref<32x64xf32, #tpu.memory_space<vmem>>, vector<32x64xf32>
    %cst = arith.constant dense<0.000000e+00> : vector<16x64xf32>
    %2 = tpu.matmul %0, %1, %cst {dimension_numbers = #tpu.dot_dimension_numbers<[1], [0], [0], [1], [0, 0, 1, 1], [], []>} : vector<16x32xf32>, vector<32x64xf32>, vector<16x64xf32> -> vector<16x64xf32>
    %c0_3 = arith.constant 0 : index
    %c0_4 = arith.constant 0 : index
    %3 = vector.load %arg3[%c0_3, %c0_4] : memref<1x64xf32, #tpu.memory_space<vmem>>, vector<1x64xf32>
    %4 = vector.broadcast %3 : vector<1x64xf32> to vector<16x64xf32>
    %5 = arith.addf %2, %4 : vector<16x64xf32>
    %cst_5 = arith.constant 5.000000e-01 : f32
    %6 = vector.broadcast %cst_5 : f32 to vector<16x64xf32>
    %7 = arith.mulf %6, %5 : vector<16x64xf32>
    %cst_6 = arith.constant 0.707106769 : f32
    %8 = vector.broadcast %cst_6 : f32 to vector<16x64xf32>
    %9 = arith.mulf %5, %8 : vector<16x64xf32>
    %10 = math.erf %9 : vector<16x64xf32>
    %cst_7 = arith.constant 1.000000e+00 : f32
    %11 = vector.broadcast %cst_7 : f32 to vector<16x64xf32>
    %12 = arith.addf %11, %10 : vector<16x64xf32>
    %13 = arith.mulf %7, %12 : vector<16x64xf32>
    %c0_8 = arith.constant 0 : index
    %c0_9 = arith.constant 0 : index
    %14 = vector.load %arg7[%c0_8, %c0_9] : memref<16x64xf32, #tpu.memory_space<vmem>>, vector<16x64xf32>
    tpu.vector_store %arg7[%c0_8, %c0_9], %13 {strides = array<i32>} : memref<16x64xf32, #tpu.memory_space<vmem>>, vector<16x64xf32>,
    %c0_10 = arith.constant 0 : index
    %c0_11 = arith.constant 0 : index
    %15 = vector.load %arg7[%c0_10, %c0_11] : memref<16x64xf32, #tpu.memory_space<vmem>>, vector<16x64xf32>
    %c0_12 = arith.constant 0 : index
    %c0_13 = arith.constant 0 : index
    %16 = vector.load %arg4[%c0_12, %c0_13] : memref<64x64xf32, #tpu.memory_space<vmem>>, vector<64x64xf32>
    %cst_14 = arith.constant dense<0.000000e+00> : vector<16x64xf32>
    %17 = tpu.matmul %15, %16, %cst_14 {dimension_numbers = #tpu.dot_dimension_numbers<[1], [0], [0], [1], [0, 0, 1, 1], [], []>} : vector<16x64xf32>, vector<64x64xf32>, vector<16x64xf32> -> vector<16x64xf32>
    %c0_15 = arith.constant 0 : index
    %c0_16 = arith.constant 0 : index
    %18 = vector.load %arg5[%c0_15, %c0_16] : memref<1x64xf32, #tpu.memory_space<vmem>>, vector<1x64xf32>
    %19 = vector.broadcast %18 : vector<1x64xf32> to vector<16x64xf32>
    %20 = arith.addf %17, %19 : vector<16x64xf32>
    %c0_17 = arith.constant 0 : index
    %c0_18 = arith.constant 0 : index
    %21 = vector.load %arg6[%c0_17, %c0_18] : memref<16x64xf32, #tpu.memory_space<vmem>>, vector<16x64xf32>
    tpu.vector_store %arg6[%c0_17, %c0_18], %20 {strides = array<i32>} : memref<16x64xf32, #tpu.memory_space<vmem>>, vector<16x64xf32>,
    return
  }
  func.func @transform_0(%arg0: i32) -> (i32, i32) {
    %c0_i32 = arith.constant 0 : i32
    %c0_i32_0 = arith.constant 0 : i32
    return %arg0, %c0_i32 : i32, i32
  }
  func.func @transform_1(%arg0: i32) -> (i32, i32) {
    %c0_i32 = arith.constant 0 : i32
    %c0_i32_0 = arith.constant 0 : i32
    %c0_i32_1 = arith.constant 0 : i32
    return %c0_i32, %c0_i32_0 : i32, i32
  }
  func.func @transform_2(%arg0: i32) -> (i32, i32) {
    %c0_i32 = arith.constant 0 : i32
    %c0_i32_0 = arith.constant 0 : i32
    %c0_i32_1 = arith.constant 0 : i32
    return %c0_i32, %c0_i32_0 : i32, i32
  }
  func.func @transform_3(%arg0: i32) -> (i32, i32) {
    %c0_i32 = arith.constant 0 : i32
    %c0_i32_0 = arith.constant 0 : i32
    %c0_i32_1 = arith.constant 0 : i32
    return %c0_i32, %c0_i32_0 : i32, i32
  }
  func.func @transform_4(%arg0: i32) -> (i32, i32) {
    %c0_i32 = arith.constant 0 : i32
    %c0_i32_0 = arith.constant 0 : i32
    %c0_i32_1 = arith.constant 0 : i32
    return %c0_i32, %c0_i32_0 : i32, i32
  }
  func.func @transform_5(%arg0: i32) -> (i32, i32) {
    %c0_i32 = arith.constant 0 : i32
    %c0_i32_0 = arith.constant 0 : i32
    return %arg0, %c0_i32 : i32, i32
  }
}

module attributes {stable_mosaic.version = 11 : i64} {
  func.func @_resident_kernel(%arg0: i32, %arg1: memref<16x32xf32, #tpu.memory_space<vmem>>, %arg2: memref<32x64xf32, #tpu.memory_space<vmem>>, %arg3: memref<1x64xf32, #tpu.memory_space<vmem>>, %arg4: memref<64x64xf32, #tpu.memory_space<vmem>>, %arg5: memref<1x64xf32, #tpu.memory_space<vmem>>, %arg6: memref<16x64xf32, #tpu.memory_space<vmem>>, %arg7: memref<16x64xf32, #tpu.memory_space<vmem>>) attributes {dimension_semantics = [#tpu.dimension_semantics<parallel>], iteration_bounds = array<i64: 1>, scalar_prefetch = 0 : i64, scratch_operands = 1 : i64, tpu.core_type = #tpu.core_type<tc>, window_params = [{transform_indices = @transform_0, window_bounds = array<i64: 16, 32>}, {pipeline_mode = #tpu.pipeline_mode<synchronous>, transform_indices = @transform_1, window_bounds = array<i64: 32, 64>}, {pipeline_mode = #tpu.pipeline_mode<synchronous>, transform_indices = @transform_2, window_bounds = array<i64: 1, 64>}, {pipeline_mode = #tpu.pipeline_mode<synchronous>, transform_indices = @transform_3, window_bounds = array<i64: 64, 64>}, {pipeline_mode = #tpu.pipeline_mode<synchronous>, transform_indices = @transform_4, window_bounds = array<i64: 1, 64>}, {transform_indices = @transform_5, window_bounds = array<i64: 16, 64>}]} {
    %c0 = arith.constant 0 : index
    %c0_0 = arith.constant 0 : index
    %0 = vector.load %arg1[%c0, %c0_0] : memref<16x32xf32, #tpu.memory_space<vmem>>, vector<16x32xf32>
    %c0_1 = arith.constant 0 : index
    %c0_2 = arith.constant 0 : index
    %1 = vector.load %arg2[%c0_1, %c0_2] : memref<32x64xf32, #tpu.memory_space<vmem>>, vector<32x64xf32>
    %cst = arith.constant dense<0.000000e+00> : vector<16x64xf32>
    %2 = tpu.matmul %0, %1, %cst {dimension_numbers = #tpu.dot_dimension_numbers<[1], [0], [0], [1], [0, 0, 1, 1], [], []>} : vector<16x32xf32>, vector<32x64xf32>, vector<16x64xf32> -> vector<16x64xf32>
    %c0_3 = arith.constant 0 : index
    %c0_4 = arith.constant 0 : index
    %3 = vector.load %arg3[%c0_3, %c0_4] : memref<1x64xf32, #tpu.memory_space<vmem>>, vector<1x64xf32>
    %4 = vector.broadcast %3 : vector<1x64xf32> to vector<16x64xf32>
    %5 = arith.addf %2, %4 : vector<16x64xf32>
    %cst_5 = arith.constant 5.000000e-01 : f32
    %6 = vector.broadcast %cst_5 : f32 to vector<16x64xf32>
    %7 = arith.mulf %6, %5 : vector<16x64xf32>
    %cst_6 = arith.constant 0.707106769 : f32
    %8 = vector.broadcast %cst_6 : f32 to vector<16x64xf32>
    %9 = arith.mulf %5, %8 : vector<16x64xf32>
    %10 = math.erf %9 : vector<16x64xf32>
    %cst_7 = arith.constant 1.000000e+00 : f32
    %11 = vector.broadcast %cst_7 : f32 to vector<16x64xf32>
    %12 = arith.addf %11, %10 : vector<16x64xf32>
    %13 = arith.mulf %7, %12 : vector<16x64xf32>
    %c0_8 = arith.constant 0 : index
    %c0_9 = arith.constant 0 : index
    %14 = vector.load %arg7[%c0_8, %c0_9] : memref<16x64xf32, #tpu.memory_space<vmem>>, vector<16x64xf32>
    tpu.vector_store %arg7[%c0_8, %c0_9], %13 {strides = array<i32>} : memref<16x64xf32, #tpu.memory_space<vmem>>, vector<16x64xf32>,
    %c0_10 = arith.constant 0 : index
    %c0_11 = arith.constant 0 : index
    %15 = vector.load %arg7[%c0_10, %c0_11] : memref<16x64xf32, #tpu.memory_space<vmem>>, vector<16x64xf32>
    %c0_12 = arith.constant 0 : index
    %c0_13 = arith.constant 0 : index
    %16 = vector.load %arg4[%c0_12, %c0_13] : memref<64x64xf32, #tpu.memory_space<vmem>>, vector<64x64xf32>
    %cst_14 = arith.constant dense<0.000000e+00> : vector<16x64xf32>
    %17 = tpu.matmul %15, %16, %cst_14 {dimension_numbers = #tpu.dot_dimension_numbers<[1], [0], [0], [1], [0, 0, 1, 1], [], []>} : vector<16x64xf32>, vector<64x64xf32>, vector<16x64xf32> -> vector<16x64xf32>
    %c0_15 = arith.constant 0 : index
    %c0_16 = arith.constant 0 : index
    %18 = vector.load %arg5[%c0_15, %c0_16] : memref<1x64xf32, #tpu.memory_space<vmem>>, vector<1x64xf32>
    %19 = vector.broadcast %18 : vector<1x64xf32> to vector<16x64xf32>
    %20 = arith.addf %17, %19 : vector<16x64xf32>
    %c0_17 = arith.constant 0 : index
    %c0_18 = arith.constant 0 : index
    %21 = vector.load %arg6[%c0_17, %c0_18] : memref<16x64xf32, #tpu.memory_space<vmem>>, vector<16x64xf32>
    tpu.vector_store %arg6[%c0_17, %c0_18], %20 {strides = array<i32>} : memref<16x64xf32, #tpu.memory_space<vmem>>, vector<16x64xf32>,
    return
  }
  func.func @transform_0(%arg0: i32) -> (i32, i32) {
    %c0_i32 = arith.constant 0 : i32
    %c0_i32_0 = arith.constant 0 : i32
    return %arg0, %c0_i32 : i32, i32
  }
  func.func @transform_1(%arg0: i32) -> (i32, i32) {
    %c0_i32 = arith.constant 0 : i32
    %c0_i32_0 = arith.constant 0 : i32
    %c0_i32_1 = arith.constant 0 : i32
    return %c0_i32, %c0_i32_0 : i32, i32
  }
  func.func @transform_2(%arg0: i32) -> (i32, i32) {
    %c0_i32 = arith.constant 0 : i32
    %c0_i32_0 = arith.constant 0 : i32
    %c0_i32_1 = arith.constant 0 : i32
    return %c0_i32, %c0_i32_0 : i32, i32
  }
  func.func @transform_3(%arg0: i32) -> (i32, i32) {
    %c0_i32 = arith.constant 0 : i32
    %c0_i32_0 = arith.constant 0 : i32
    %c0_i32_1 = arith.constant 0 : i32
    return %c0_i32, %c0_i32_0 : i32, i32
  }
  func.func @transform_4(%arg0: i32) -> (i32, i32) {
    %c0_i32 = arith.constant 0 : i32
    %c0_i32_0 = arith.constant 0 : i32
    %c0_i32_1 = arith.constant 0 : i32
    return %c0_i32, %c0_i32_0 : i32, i32
  }
  func.func @transform_5(%arg0: i32) -> (i32, i32) {
    %c0_i32 = arith.constant 0 : i32
    %c0_i32_0 = arith.constant 0 : i32
    return %arg0, %c0_i32 : i32, i32
  }
}

</mosaic_0001>

<bundles_post_ra>
// kernel: tpu_custom_call.1
= control target key start
LH: loop header
LB: loop body
LE: loop exit
PB: predicated region body
PF: predicated region fallthrough
CT: control target
= control target key end

     0   :  { %10 = vsyncpa [#allocation4], 0  ;;  %s583_s0 = inlined_call_operand.hbm [shape: f32[16,32], index: 0, kind: input, shape index: {}]   ;;  %s584_s1 = inlined_call_operand.hbm [shape: f32[32,64], index: 1, kind: input, shape index: {}]   ;;  %s585_s2 = inlined_call_operand.vmem [shape: f32[1,64], index: 2, kind: input, shape index: {}]   ;;  %s586_s3 = inlined_call_operand.hbm [shape: f32[64,64], index: 3, kind: input, shape index: {}]   ;;  %s587_s4 = inlined_call_operand.vmem [shape: f32[1,64], index: 4, kind: input, shape index: {}]   ;;  %s588_s5 = inlined_call_operand.hbm [shape: f32[16,64], index: 5, kind: output, shape index: {}]  }
   0x1   :  { %11 = vsyncpa [#allocation7], 0 }
   0x2   :  { %12 = vsyncpa [#allocation5], 0  ;;  %s468_s18 = smov [#allocation6]   ;;  %s469_s20 = smov [#allocation3]  }
   0x3   :  { %s30_s19 = sshll.u32 %s468_s18, 4  ;;  %s18_s21 = sshll.u32 %s469_s20, 4  ;;  %s31_s19 = int_to_ptr.vmem [resolvable:$true] %s30_s19  ;;  %s504_s21 = int_to_ptr.vmem [resolvable:$true] %s18_s21 }
   0x4   :  { %s374_s24 = scalar_lea.hbm %s584_s1, 512 }
   0x5   :  { %p375_p0 = scmp.ne.s32.totalorder %s584_s1, %s374_s24  ;;  %p378_p1 = scmp.lt.u32.totalorder %s374_s24, %s584_s1 }
   0x7   :  { %p380_p2 = pnand %p378_p1, %p375_p0 }
   0x9   :  { %383 = shalt.err (!%p380_p2)
}
   0xa   :  { %s384_s29 = scalar_lea.vmem %s31_s19, 512  ;;  %p389_p4 = scmp.lt.s32.totalorder %s31_s19, %s31_s19 }
   0xb   :  { %p385_p3 = scmp.ne.s32.totalorder %s31_s19, %s384_s29  ;;  %p390_p5 = scmp.lt.s32.totalorder %s384_s29, %s384_s29 }
   0xd   :  { %p391_p6 = por %p390_p5, %p389_p4 }
   0xf   :  { %p392_p7 = pnand %p391_p6, %p385_p3 }
  0x11   :  { %395 = shalt.err (!%p392_p7)
}
  0x12   :  { %s470_s30 = smov 128   ;;  %s471_s6 = smov 8  }
  0x13   :  { %36 = dma.hbm_to_vmem [thread:$0]  %s584_s1, 512, %s31_s19, [#allocation7], %s470_s30, %s470_s30, %s471_s6  }
  0x14   :  { %s396_s11 = scalar_lea.hbm %s583_s0, 256 }
  0x15   :  { %p397_p8 = scmp.ne.s32.totalorder %s583_s0, %s396_s11  ;;  %p400_p9 = scmp.lt.u32.totalorder %s396_s11, %s583_s0 }
  0x17   :  { %p402_p10 = pnand %p400_p9, %p397_p8 }
  0x19   :  { %405 = shalt.err (!%p402_p10)
}
  0x1a   :  { %s406_s16 = scalar_lea.vmem %s504_s21, 256  ;;  %p411_p12 = scmp.lt.s32.totalorder %s504_s21, %s504_s21 }
  0x1b   :  { %p407_p11 = scmp.ne.s32.totalorder %s504_s21, %s406_s16  ;;  %p412_p13 = scmp.lt.s32.totalorder %s406_s16, %s406_s16 }
  0x1d   :  { %p413_p0 = por %p412_p13, %p411_p12 }
  0x1f   :  { %p414_p1 = pnand %p413_p0, %p407_p11 }
  0x21   :  { %417 = shalt.err (!%p414_p1)
}
  0x22   :  { %24 = dma.hbm_to_vmem [thread:$0]  %s583_s0, 256, %s504_s21, [#allocation4], %s470_s30, %s470_s30, %s471_s6  }
  0x23   :  { %s472_s18 = smov [#allocation8]   ;;  %s418_s23 = scalar_lea.hbm %s586_s3, 1024 }
  0x24   :  { %s44_s19 = sshll.u32 %s472_s18, 4  ;;  %p419_p2 = scmp.ne.s32.totalorder %s586_s3, %s418_s23  ;;  %s45_s19 = int_to_ptr.vmem [resolvable:$true] %s44_s19 }
  0x25   :  { %p422_p3 = scmp.lt.u32.totalorder %s418_s23, %s586_s3 }
  0x27   :  { %p424_p4 = pnand %p422_p3, %p419_p2 }
  0x29   :  { %427 = shalt.err (!%p424_p4)
}
  0x2a   :  { %s428_s28 = scalar_lea.vmem %s45_s19, 1024  ;;  %p433_p6 = scmp.lt.s32.totalorder %s45_s19, %s45_s19 }
  0x2b   :  { %p429_p5 = scmp.ne.s32.totalorder %s45_s19, %s428_s28  ;;  %p434_p7 = scmp.lt.s32.totalorder %s428_s28, %s428_s28 }
  0x2d   :  { %p435_p8 = por %p434_p7, %p433_p6 }
  0x2f   :  { %p436_p9 = pnand %p435_p8, %p429_p5 }
  0x31   :  { %439 = shalt.err (!%p436_p9)
}
  0x32   :  { %50 = dma.hbm_to_vmem [thread:$0]  %s586_s3, 1024, %s45_s19, [#allocation7], %s470_s30, %s470_s30, %s471_s6  }
  0x33   :  { %462 = dma.done.wait [#allocation4], 256  }
  0x34   :  { %463 = vsyncadd [#allocation4], 4294967040 }
  0x35   :  { %464 = dma.done.wait [#allocation7], 1536  }
  0x36   :  { %465 = vsyncadd [#allocation7], 4294965760  ;;  %vm75_vm0 = vcmask 261120   ;;  %v64_v0 = vld [vmem:[#allocation6] sm:$0xff]  ;;  %v65_v1 = vld [vmem:[#allocation6 + $0x8] sm:$0xff]  ;;  %vm167_vm1 = vcmask 523264  }
  0x37   :  { %v66_v2 = vld [vmem:[#allocation6 + $0x10] sm:$0xff]  ;;  %v340_v3 = vpack.c.bf16 %v65_v1, %v64_v0  ;;  %v67_v4 = vld [vmem:[#allocation6 + $0x18] sm:$0xff]  ;;  %v172_v8 = vld [vmem:[#allocation8] sm:$0xff]  ;;  %s473_s8 = smov [#allocation9]  }
  0x38   :  { %v62_v5 = vld [vmem:[#allocation3] sm:$0xff]  ;;  %v344_v6 = vpack.c.bf16 %v67_v4, %v66_v2  ;;  %v63_v7 = vld [vmem:[#allocation3 + $0x8] sm:$0xff]  ;;  %v173_v9 = vld [vmem:[#allocation8 + $0x8] sm:$0xff]  ;;  %s275_s9 = sshll.u32 %s473_s8, 4  ;;  %s276_s9 = int_to_ptr.vmem [resolvable:$true] %s275_s9 }
  0x39   :  { %318 = vmatprep.mubr.msk.f32.mxu0 %vm75_vm0, %v62_v5  ;;  %341 = vmatprep.subr.bf16.mxu0 %v340_v3  ;;  %v348_v10 = vpack.c.bf16 %v173_v9, %v172_v8  ;;  %v174_v11 = vld [vmem:[#allocation8 + $0x10] sm:$0xff]  ;;  %v175_v12 = vld [vmem:[#allocation8 + $0x18] sm:$0xff]  ;;  %v176_v14 = vld [vmem:[#allocation8 + $0x20] sm:$0xff]  ;;  %s440_s10 = scalar_lea.vmem %s276_s9, 256  ;;  %p445_p11 = scmp.lt.s32.totalorder %s276_s9, %s276_s9 }
  0x3a   :  { %343 = vmatpush3.bf16.msra.mxu0 %v340_v3  ;;  %v352_v13 = vpack.c.bf16 %v175_v12, %v174_v11  ;;  %v177_v15 = vld [vmem:[#allocation8 + $0x28] sm:$0xff]  ;;  %v178_v16 = vld [vmem:[#allocation8 + $0x30] sm:$0xff]  ;;  %v179_v18 = vld [vmem:[#allocation8 + $0x38] sm:$0xff]  ;;  %p441_p10 = scmp.ne.s32.totalorder %s276_s9, %s440_s10  ;;  %p446_p12 = scmp.lt.s32.totalorder %s440_s10, %s440_s10 }
  0x3b   :  { %345 = vmatprep.subr.bf16.mxu0 %v344_v6  ;;  %349 = vmatprep.subr.bf16.mxu1 %v348_v10  ;;  %v356_v17 = vpack.c.bf16 %v177_v15, %v176_v14  ;;  %v360_v19 = vpack.c.bf16 %v179_v18, %v178_v16  ;;  %v288_v20 = vld [vmem:[%s585_s2] ss:$0 sm:$0xff] }
  0x3c   :  { %351 = vmatpush3.bf16.msra.mxu1 %v348_v10  ;;  %v291_v37 = vld [vmem:[%s587_s4] ss:$0 sm:$0xff]  ;;  %p447_p13 = por %p446_p12, %p445_p11 }
  0x3d   :  { %353 = vmatprep.subr.bf16.mxu1 %v352_v13 }
  0x3e   :  { %347 = vmatpush3.bf16.msra.mxu0 %v344_v6  ;;  %p448_p0 = pnand %p447_p13, %p441_p10 }
  0x40   :  { %355 = vmatpush3.bf16.msra.mxu1 %v352_v13 }
  0x41   :  { %319 = vmatmul.mubr.msk.f32.vlgmr.msra.gmra.mrb[0].mxu0 %vm75_vm0, %v63_v7  ;;  %357 = vmatprep.subr.bf16.mxu1 %v356_v17 }
  0x44   :  { %359 = vmatpush3.bf16.msra.mxu1 %v356_v17 }
  0x45   :  { %361 = vmatprep.subr.bf16.mxu1 %v360_v19 }
  0x48   :  { %363 = vmatpush3.bf16.msra.mxu1 %v360_v19 }
 0x114   :  { %v320_v21 = vpop.f32.mrb[0].mxu0 }
 0x115   :  { %v154_v22 = vadd.f32 %v320_v21, %v288_v20  ;;  %v148_v23 = vpop.f32.mrb[1].mxu0 }
 0x116   :  { %v149_v24 = vadd.f32 %v288_v20, %v148_v23 }
 0x117   :  { %v160_v25 = vmul.f32 0.70710677, %v154_v22  ;;  %v158_v29 = vmul.f32 0.5, %v154_v22 }
 0x118   :  { %v159_v26 = vmul.f32 0.70710677, %v149_v24  ;;  %v157_v31 = vmul.f32 0.5, %v149_v24 }
 0x119   :  { %370 = verf.f32 %v160_v25 }
 0x11a   :  { %372 = verf.f32 %v159_v26 }
 0x123   :  { %v371_v27 = vpop.eup %370 }
 0x124   :  { %v373_v28 = vpop.eup %372  ;;  %v164_v30 = vadd.f32 1.0, %v371_v27 }
 0x125   :  { %v163_v32 = vadd.f32 1.0, %v373_v28 }
 0x126   :  { %v166_v33 = vmul.f32 %v164_v30, %v158_v29 }
 0x127   :  { %v165_v34 = vmul.f32 %v163_v32, %v157_v31 }
 0x128   :  { %169 = vst.msk [vmem:[#allocation2 + $0x8] sm:$0xff] %vm167_vm1, %v166_v33 }
 0x129   :  { %168 = vst.msk [vmem:[#allocation2] sm:$0xff] %vm167_vm1, %v165_v34 }
 0x12f   :  { %v171_v36 = vld [vmem:[#allocation2 + $0x8] sm:$0xff] }
 0x130   :  { %v170_v35 = vld [vmem:[#allocation2] sm:$0xff] }
 0x131   :  { %337 = vmatprep.mubr.msk.f32.mxu1 %vm167_vm1, %v170_v35 }
 0x132   :  { %338 = vmatmul.mubr.msk.f32.vlgmr.msra.gmra.mrb[0].mxu1 %vm167_vm1, %v171_v36 }
 0x205   :  { %v339_v38 = vpop.f32.mrb[0].mxu1 }
 0x206   :  { %v265_v39 = vadd.f32 %v339_v38, %v291_v37  ;;  %v259_v40 = vpop.f32.mrb[1].mxu1 }
 0x207   :  { %v260_v41 = vadd.f32 %v291_v37, %v259_v40 }
 0x208   :  { %269 = vst.msk [vmem:[#allocation9 + $0x8] sm:$0xff] %vm167_vm1, %v265_v39 }
 0x209   :  { %268 = vst.msk [vmem:[#allocation9] sm:$0xff] %vm167_vm1, %v260_v41 }
 0x20a   :  { %451 = shalt.err (!%p448_p0)
}
 0x20b   :  { %s452_s12 = scalar_lea.hbm %s588_s5, 256 }
 0x20c   :  { %p453_p1 = scmp.ne.s32.totalorder %s588_s5, %s452_s12  ;;  %p456_p2 = scmp.lt.u32.totalorder %s452_s12, %s588_s5 }
 0x20e   :  { %p458_p3 = pnand %p456_p2, %p453_p1 }
 0x210   :  { %461 = shalt.err (!%p458_p3)
}
 0x211   :  { %281 = dma.vmem_to_hbm [thread:$0]  %s276_s9, 256, %s588_s5, [#allocation5], %s470_s30, %s470_s30, %s471_s6  }
 0x212   :  { %466 = dma.done.wait [#allocation5], 256  }
 0x213   :  { %467 = vsyncadd [#allocation5], 4294967040 }
 0x214   :  { %285 = vsyncpa [#allocation4], 1 }
 0x215   :  { %286 = vsyncpa [#allocation7], 1 }
 0x216   :  { %287 = vsyncpa [#allocation5], 1 }

// kernel: tpu_custom_call.1
= control target key start
LH: loop header
LB: loop body
LE: loop exit
PB: predicated region body
PF: predicated region fallthrough
CT: control target
= control target key end

     0   :  { %10 = vsyncpa [#allocation4], 0  ;;  %s583_s0 = inlined_call_operand.hbm [shape: f32[16,32], index: 0, kind: input, shape index: {}]   ;;  %s584_s1 = inlined_call_operand.hbm [shape: f32[32,64], index: 1, kind: input, shape index: {}]   ;;  %s585_s2 = inlined_call_operand.vmem [shape: f32[1,64], index: 2, kind: input, shape index: {}]   ;;  %s586_s3 = inlined_call_operand.hbm [shape: f32[64,64], index: 3, kind: input, shape index: {}]   ;;  %s587_s4 = inlined_call_operand.vmem [shape: f32[1,64], index: 4, kind: input, shape index: {}]   ;;  %s588_s5 = inlined_call_operand.hbm [shape: f32[16,64], index: 5, kind: output, shape index: {}]  }
   0x1   :  { %11 = vsyncpa [#allocation7], 0 }
   0x2   :  { %12 = vsyncpa [#allocation5], 0  ;;  %s468_s18 = smov [#allocation6]   ;;  %s469_s20 = smov [#allocation3]  }
   0x3   :  { %s30_s19 = sshll.u32 %s468_s18, 4  ;;  %s18_s21 = sshll.u32 %s469_s20, 4  ;;  %s31_s19 = int_to_ptr.vmem [resolvable:$true] %s30_s19  ;;  %s504_s21 = int_to_ptr.vmem [resolvable:$true] %s18_s21 }
   0x4   :  { %s374_s24 = scalar_lea.hbm %s584_s1, 512 }
   0x5   :  { %p375_p0 = scmp.ne.s32.totalorder %s584_s1, %s374_s24  ;;  %p378_p1 = scmp.lt.u32.totalorder %s374_s24, %s584_s1 }
   0x7   :  { %p380_p2 = pnand %p378_p1, %p375_p0 }
   0x9   :  { %383 = shalt.err (!%p380_p2)
}
   0xa   :  { %s384_s29 = scalar_lea.vmem %s31_s19, 512  ;;  %p389_p4 = scmp.lt.s32.totalorder %s31_s19, %s31_s19 }
   0xb   :  { %p385_p3 = scmp.ne.s32.totalorder %s31_s19, %s384_s29  ;;  %p390_p5 = scmp.lt.s32.totalorder %s384_s29, %s384_s29 }
   0xd   :  { %p391_p6 = por %p390_p5, %p389_p4 }
   0xf   :  { %p392_p7 = pnand %p391_p6, %p385_p3 }
  0x11   :  { %395 = shalt.err (!%p392_p7)
}
  0x12   :  { %s470_s30 = smov 128   ;;  %s471_s6 = smov 8  }
  0x13   :  { %36 = dma.hbm_to_vmem [thread:$0]  %s584_s1, 512, %s31_s19, [#allocation7], %s470_s30, %s470_s30, %s471_s6  }
  0x14   :  { %s396_s11 = scalar_lea.hbm %s583_s0, 256 }
  0x15   :  { %p397_p8 = scmp.ne.s32.totalorder %s583_s0, %s396_s11  ;;  %p400_p9 = scmp.lt.u32.totalorder %s396_s11, %s583_s0 }
  0x17   :  { %p402_p10 = pnand %p400_p9, %p397_p8 }
  0x19   :  { %405 = shalt.err (!%p402_p10)
}
  0x1a   :  { %s406_s16 = scalar_lea.vmem %s504_s21, 256  ;;  %p411_p12 = scmp.lt.s32.totalorder %s504_s21, %s504_s21 }
  0x1b   :  { %p407_p11 = scmp.ne.s32.totalorder %s504_s21, %s406_s16  ;;  %p412_p13 = scmp.lt.s32.totalorder %s406_s16, %s406_s16 }
  0x1d   :  { %p413_p0 = por %p412_p13, %p411_p12 }
  0x1f   :  { %p414_p1 = pnand %p413_p0, %p407_p11 }
  0x21   :  { %417 = shalt.err (!%p414_p1)
}
  0x22   :  { %24 = dma.hbm_to_vmem [thread:$0]  %s583_s0, 256, %s504_s21, [#allocation4], %s470_s30, %s470_s30, %s471_s6  }
  0x23   :  { %s472_s18 = smov [#allocation8]   ;;  %s418_s23 = scalar_lea.hbm %s586_s3, 1024 }
  0x24   :  { %s44_s19 = sshll.u32 %s472_s18, 4  ;;  %p419_p2 = scmp.ne.s32.totalorder %s586_s3, %s418_s23  ;;  %s45_s19 = int_to_ptr.vmem [resolvable:$true] %s44_s19 }
  0x25   :  { %p422_p3 = scmp.lt.u32.totalorder %s418_s23, %s586_s3 }
  0x27   :  { %p424_p4 = pnand %p422_p3, %p419_p2 }
  0x29   :  { %427 = shalt.err (!%p424_p4)
}
  0x2a   :  { %s428_s28 = scalar_lea.vmem %s45_s19, 1024  ;;  %p433_p6 = scmp.lt.s32.totalorder %s45_s19, %s45_s19 }
  0x2b   :  { %p429_p5 = scmp.ne.s32.totalorder %s45_s19, %s428_s28  ;;  %p434_p7 = scmp.lt.s32.totalorder %s428_s28, %s428_s28 }
  0x2d   :  { %p435_p8 = por %p434_p7, %p433_p6 }
  0x2f   :  { %p436_p9 = pnand %p435_p8, %p429_p5 }
  0x31   :  { %439 = shalt.err (!%p436_p9)
}
  0x32   :  { %50 = dma.hbm_to_vmem [thread:$0]  %s586_s3, 1024, %s45_s19, [#allocation7], %s470_s30, %s470_s30, %s471_s6  }
  0x33   :  { %462 = dma.done.wait [#allocation4], 256  }
  0x34   :  { %463 = vsyncadd [#allocation4], 4294967040 }
  0x35   :  { %464 = dma.done.wait [#allocation7], 1536  }
  0x36   :  { %465 = vsyncadd [#allocation7], 4294965760  ;;  %vm75_vm0 = vcmask 261120   ;;  %v64_v0 = vld [vmem:[#allocation6] sm:$0xff]  ;;  %v65_v1 = vld [vmem:[#allocation6 + $0x8] sm:$0xff]  ;;  %vm167_vm1 = vcmask 523264  }
  0x37   :  { %v66_v2 = vld [vmem:[#allocation6 + $0x10] sm:$0xff]  ;;  %v340_v3 = vpack.c.bf16 %v65_v1, %v64_v0  ;;  %v67_v4 = vld [vmem:[#allocation6 + $0x18] sm:$0xff]  ;;  %v172_v8 = vld [vmem:[#allocation8] sm:$0xff]  ;;  %s473_s8 = smov [#allocation9]  }
  0x38   :  { %v62_v5 = vld [vmem:[#allocation3] sm:$0xff]  ;;  %v344_v6 = vpack.c.bf16 %v67_v4, %v66_v2  ;;  %v63_v7 = vld [vmem:[#allocation3 + $0x8] sm:$0xff]  ;;  %v173_v9 = vld [vmem:[#allocation8 + $0x8] sm:$0xff]  ;;  %s275_s9 = sshll.u32 %s473_s8, 4  ;;  %s276_s9 = int_to_ptr.vmem [resolvable:$true] %s275_s9 }
  0x39   :  { %318 = vmatprep.mubr.msk.f32.mxu0 %vm75_vm0, %v62_v5  ;;  %341 = vmatprep.subr.bf16.mxu0 %v340_v3  ;;  %v348_v10 = vpack.c.bf16 %v173_v9, %v172_v8  ;;  %v174_v11 = vld [vmem:[#allocation8 + $0x10] sm:$0xff]  ;;  %v175_v12 = vld [vmem:[#allocation8 + $0x18] sm:$0xff]  ;;  %v176_v14 = vld [vmem:[#allocation8 + $0x20] sm:$0xff]  ;;  %s440_s10 = scalar_lea.vmem %s276_s9, 256  ;;  %p445_p11 = scmp.lt.s32.totalorder %s276_s9, %s276_s9 }
  0x3a   :  { %343 = vmatpush3.bf16.msra.mxu0 %v340_v3  ;;  %v352_v13 = vpack.c.bf16 %v175_v12, %v174_v11  ;;  %v177_v15 = vld [vmem:[#allocation8 + $0x28] sm:$0xff]  ;;  %v178_v16 = vld [vmem:[#allocation8 + $0x30] sm:$0xff]  ;;  %v179_v18 = vld [vmem:[#allocation8 + $0x38] sm:$0xff]  ;;  %p441_p10 = scmp.ne.s32.totalorder %s276_s9, %s440_s10  ;;  %p446_p12 = scmp.lt.s32.totalorder %s440_s10, %s440_s10 }
  0x3b   :  { %345 = vmatprep.subr.bf16.mxu0 %v344_v6  ;;  %349 = vmatprep.subr.bf16.mxu1 %v348_v10  ;;  %v356_v17 = vpack.c.bf16 %v177_v15, %v176_v14  ;;  %v360_v19 = vpack.c.bf16 %v179_v18, %v178_v16  ;;  %v288_v20 = vld [vmem:[%s585_s2] ss:$0 sm:$0xff] }
  0x3c   :  { %351 = vmatpush3.bf16.msra.mxu1 %v348_v10  ;;  %v291_v37 = vld [vmem:[%s587_s4] ss:$0 sm:$0xff]  ;;  %p447_p13 = por %p446_p12, %p445_p11 }
  0x3d   :  { %353 = vmatprep.subr.bf16.mxu1 %v352_v13 }
  0x3e   :  { %347 = vmatpush3.bf16.msra.mxu0 %v344_v6  ;;  %p448_p0 = pnand %p447_p13, %p441_p10 }
  0x40   :  { %355 = vmatpush3.bf16.msra.mxu1 %v352_v13 }
  0x41   :  { %319 = vmatmul.mubr.msk.f32.vlgmr.msra.gmra.mrb[0].mxu0 %vm75_vm0, %v63_v7  ;;  %357 = vmatprep.subr.bf16.mxu1 %v356_v17 }
  0x44   :  { %359 = vmatpush3.bf16.msra.mxu1 %v356_v17 }
  0x45   :  { %361 = vmatprep.subr.bf16.mxu1 %v360_v19 }
  0x48   :  { %363 = vmatpush3.bf16.msra.mxu1 %v360_v19 }
 0x114   :  { %v320_v21 = vpop.f32.mrb[0].mxu0 }
 0x115   :  { %v154_v22 = vadd.f32 %v320_v21, %v288_v20  ;;  %v148_v23 = vpop.f32.mrb[1].mxu0 }
 0x116   :  { %v149_v24 = vadd.f32 %v288_v20, %v148_v23 }
 0x117   :  { %v160_v25 = vmul.f32 0.70710677, %v154_v22  ;;  %v158_v29 = vmul.f32 0.5, %v154_v22 }
 0x118   :  { %v159_v26 = vmul.f32 0.70710677, %v149_v24  ;;  %v157_v31 = vmul.f32 0.5, %v149_v24 }
 0x119   :  { %370 = verf.f32 %v160_v25 }
 0x11a   :  { %372 = verf.f32 %v159_v26 }
 0x123   :  { %v371_v27 = vpop.eup %370 }
 0x124   :  { %v373_v28 = vpop.eup %372  ;;  %v164_v30 = vadd.f32 1.0, %v371_v27 }
 0x125   :  { %v163_v32 = vadd.f32 1.0, %v373_v28 }
 0x126   :  { %v166_v33 = vmul.f32 %v164_v30, %v158_v29 }
 0x127   :  { %v165_v34 = vmul.f32 %v163_v32, %v157_v31 }
 0x128   :  { %169 = vst.msk [vmem:[#allocation2 + $0x8] sm:$0xff] %vm167_vm1, %v166_v33 }
 0x129   :  { %168 = vst.msk [vmem:[#allocation2] sm:$0xff] %vm167_vm1, %v165_v34 }
 0x12f   :  { %v171_v36 = vld [vmem:[#allocation2 + $0x8] sm:$0xff] }
 0x130   :  { %v170_v35 = vld [vmem:[#allocation2] sm:$0xff] }
 0x131   :  { %337 = vmatprep.mubr.msk.f32.mxu1 %vm167_vm1, %v170_v35 }
 0x132   :  { %338 = vmatmul.mubr.msk.f32.vlgmr.msra.gmra.mrb[0].mxu1 %vm167_vm1, %v171_v36 }
 0x205   :  { %v339_v38 = vpop.f32.mrb[0].mxu1 }
 0x206   :  { %v265_v39 = vadd.f32 %v339_v38, %v291_v37  ;;  %v259_v40 = vpop.f32.mrb[1].mxu1 }
 0x207   :  { %v260_v41 = vadd.f32 %v291_v37, %v259_v40 }
 0x208   :  { %269 = vst.msk [vmem:[#allocation9 + $0x8] sm:$0xff] %vm167_vm1, %v265_v39 }
 0x209   :  { %268 = vst.msk [vmem:[#allocation9] sm:$0xff] %vm167_vm1, %v260_v41 }
 0x20a   :  { %451 = shalt.err (!%p448_p0)
}
 0x20b   :  { %s452_s12 = scalar_lea.hbm %s588_s5, 256 }
 0x20c   :  { %p453_p1 = scmp.ne.s32.totalorder %s588_s5, %s452_s12  ;;  %p456_p2 = scmp.lt.u32.totalorder %s452_s12, %s588_s5 }
 0x20e   :  { %p458_p3 = pnand %p456_p2, %p453_p1 }
 0x210   :  { %461 = shalt.err (!%p458_p3)
}
 0x211   :  { %281 = dma.vmem_to_hbm [thread:$0]  %s276_s9, 256, %s588_s5, [#allocation5], %s470_s30, %s470_s30, %s471_s6  }
 0x212   :  { %466 = dma.done.wait [#allocation5], 256  }
 0x213   :  { %467 = vsyncadd [#allocation5], 4294967040 }
 0x214   :  { %285 = vsyncpa [#allocation4], 1 }
 0x215   :  { %286 = vsyncpa [#allocation7], 1 }
 0x216   :  { %287 = vsyncpa [#allocation5], 1 }

</bundles_post_ra>
